<compile_context>
chip_gen: v6e
topology: v6e:2x2x1
jax: 0.10.0
libtpu: 0.0.40
codegen_flags: <defaults>
</compile_context>

<pallas_src>
import functools

import jax
import jax.numpy as jnp
import numpy as np
from jax import lax
from jax.experimental import pallas as pl
from jax.experimental.pallas import tpu as pltpu


def _round_up(x: int, m: int) -> int:
    return (x + m - 1) // m * m


def _vmem_limit_bytes() -> int:
    """Generation-aware scoped-VMEM budget (~3/4 of physical, capped at 96 MiB)."""
    default = 48 * 1024 * 1024          # safe on every generation (v7x: 64 MiB phys)
    try:
        cap = int(getattr(pltpu.get_tpu_info(), "vmem_capacity_bytes", 0))
        if cap > 0:
            return min(max(cap * 3 // 4, 32 * 1024 * 1024), 96 * 1024 * 1024)
    except Exception:
        pass
    return default


def _tcn_kernel(x_ref, w_ref, b_ref, o_ref, *, kernel_size: int, inner_t: int,
                n_inner: int, macro_t: int, halo: int, stride: int):
    """Fused temporal-conv kernel.

    x_ref: (C, Lpad)        full (padded) time series of current batch, resident in VMEM
    w_ref: (K, O, C)        per-tap weight matrices
    b_ref: (O, 1)           bias column
    o_ref: (O, macro_t)     output macro tile (time is the lane / fast axis)
    """
    macro_start = pl.multiple_of(pl.program_id(1) * macro_t, 128)
    out_c = o_ref.shape[0]
    # Hoisted loop invariants (JAX does not CSE broadcasts inside loops).
    bias_b = jnp.broadcast_to(b_ref[...], (out_c, inner_t))
    lane = lax.broadcasted_iota(jnp.int32, (1, inner_t), 1)

    def body(j, carry):
        base = pl.multiple_of(j * inner_t, 128)
        start = pl.multiple_of(macro_start + base, 128)
        # One aligned slab read per inner tile from the resident per-batch row;
        # per-tap shifted views come from XLU rolls (no unaligned VMEM re-slicing).
        slab = x_ref[:, pl.ds(start, inner_t + halo)]            # (C, TI + halo)
        width = inner_t + halo
        acc = jnp.zeros((out_c, inner_t), jnp.float32)
        # TODO(synk): fold the K taps into one (O, C*K) @ (C*K, TI) dot (MXU-side
        # accumulation); minor in the current HBM-bound regime.
        for k in range(kernel_size):                              # static unroll
            if k == 0:
                xk = slab[:, :inner_t]
            else:
                xk = pltpu.roll(slab, shift=width - k, axis=1)[:, :inner_t]
            acc = acc + jnp.dot(w_ref[k], xk, preferred_element_type=jnp.float32)
        val = acc + bias_b
        if stride > 1:
            # Module semantics: only columns t with t % stride == 0 are written,
            # the rest stay exactly 0 (torch.zeros).
            col = lane + (macro_start + base)
            val = jnp.where(col % stride == 0, val, 0.0)
        o_ref[:, pl.ds(base, inner_t)] = val.astype(o_ref.dtype)
        return carry

    lax.fori_loop(0, n_inner, body, 0, unroll=(n_inner <= 8))


def temporal_convolution(x, weights, bias, *, stride: int = 1, padding: int = 0,
                         inner_tile: int = 512, macro_tile: int = 16384,
                         use_bf16: bool = False):
    """Pallas implementation of TemporalConvolution.forward.

    x:       (batch, in_channels, samples) float32
    weights: (out_channels, in_channels, kernel_size)
    bias:    (out_channels,) or None
    returns: (batch, out_channels, nlength) float32,
             nlength = (samples - kernel_size + padding) // stride
    """
    batch, nvars, samples = x.shape
    out_channels, in_channels, kernel_size = weights.shape
    if nvars != in_channels:
        raise ValueError("Number of input channels is inconsistent with in_channels")
    if stride < 1 or padding < 0 or kernel_size < 1:
        raise ValueError("invalid stride / padding / kernel_size")

    nlength = (samples - kernel_size + padding) // stride
    if nlength <= 0:
        return jnp.zeros((batch, out_channels, max(nlength, 0)), jnp.float32)

    x = x.astype(jnp.float32)
    weights = weights.astype(jnp.float32)
    if bias is None:
        bias = jnp.zeros((out_channels,), jnp.float32)
    bias_col = bias.astype(jnp.float32).reshape(out_channels, 1)

    # ---- tiling ---------------------------------------------------------------
    T = nlength
    TI = min(_round_up(max(inner_tile, 128), 128), _round_up(T, 128))   # inner tile
    n_ti = -(-T // TI)                                                   # inner tiles needed
    per_macro = max(_round_up(max(macro_tile, TI), TI) // TI, 1)
    n_macro = -(-n_ti // per_macro)
    n_inner = -(-n_ti // n_macro)
    TMACRO = n_inner * TI
    Tpad = n_macro * TMACRO
    halo = _round_up(max(kernel_size - 1, 1), 128)
    Lpad = Tpad + halo

    # ---- single fused pad pass over x ------------------------------------------
    # Left: replicate first sample `padding` times (module semantics).  Right:
    # filler columns (edge-replicated) that only feed output columns >= T, which
    # are sliced off below.  One HBM pass instead of repeat + concat + pad.
    xp_len = samples + padding
    if Lpad >= xp_len:
        x_in = jnp.pad(x, ((0, 0), (0, 0), (padding, Lpad - xp_len)), mode="edge")
    else:
        take = Lpad - padding
        if take >= 1:
            x_in = jnp.pad(x[:, :, :take], ((0, 0), (0, 0), (padding, 0)), mode="edge")
        else:  # degenerate: every read lands in the left replicate-pad region
            x_in = jnp.broadcast_to(x[:, :, :1], (batch, in_channels, Lpad))

    wk = jnp.transpose(weights, (2, 0, 1))                    # (K, O, C)
    if use_bf16:
        x_in = x_in.astype(jnp.bfloat16)
        wk = wk.astype(jnp.bfloat16)

    kernel = functools.partial(_tcn_kernel, kernel_size=kernel_size, inner_t=TI,
                               n_inner=n_inner, macro_t=TMACRO, halo=halo,
                               stride=stride)

    out_pad = pl.pallas_call(
        kernel,
        out_shape=jax.ShapeDtypeStruct((batch, out_channels, Tpad), jnp.float32),
        grid=(batch, n_macro),
        in_specs=[
            # Full (padded) per-batch row resident in VMEM: constant index map along
            # the macro-tile axis, so x is DMA'd from HBM exactly once per batch.
            pl.BlockSpec((None, in_channels, Lpad), lambda b, i: (b, 0, 0)),
            pl.BlockSpec((kernel_size, out_channels, in_channels),
                         lambda b, i: (0, 0, 0)),
            pl.BlockSpec((out_channels, 1), lambda b, i: (0, 0)),
        ],
        out_specs=pl.BlockSpec((None, out_channels, TMACRO), lambda b, i: (b, 0, i)),
        compiler_params=pltpu.CompilerParams(
            # Batch is the megacore-parallel axis; splitting the time axis across
            # TensorCores while x is resident would re-DMA the whole row per core.
            dimension_semantics=("parallel", "arbitrary"),
            vmem_limit_bytes=_vmem_limit_bytes()),
    )(x_in, wk, bias_col)
    # TODO(synk): for sequences long enough that 2x (C, Lpad) f32 exceeds the VMEM
    # budget (esp. v7x's 64 MiB), switch to a halo'd per-tile x block scheme
    # (memory_space=pl.ANY + manual double-buffered make_async_copy).
    return out_pad[:, :, :T]


def reference(x, weights, bias, stride, padding):
    """Pure-JAX transliteration of the PyTorch forward.

    Identical semantics to the module's loops: left replicate-pad with the first
    sample, window starts at t, only columns t % stride == 0 are written, the rest
    stay 0, and nlength = (samples - K + padding) // stride.
    """
    batch, C, samples = x.shape
    O, _, K = weights.shape
    pads = jnp.repeat(x[:, :, :1], padding, axis=2)
    xp = jnp.concatenate([pads, x], axis=2)
    nlength = (samples - K + padding) // stride
    wins = jnp.stack([xp[:, :, t:t + K] for t in range(nlength)], axis=2)  # (B,C,T,K)
    out = jnp.einsum("bctk,ock->bot", wins, weights.astype(jnp.float32))
    if bias is not None:
        out = out + bias[None, :, None]
    mask = (jnp.arange(nlength) % stride) == 0
    return jnp.where(mask[None, None, :], out, 0.0).astype(jnp.float32)


if __name__ == "__main__":
    key = jax.random.PRNGKey(0)

    def check(batch, C, O, samples, K, padding, strides, **tile_kwargs):
        kx, kwt, kb = jax.random.split(jax.random.fold_in(key, samples), 3)
        x = jax.random.normal(kx, (batch, C, samples), dtype=jnp.float32)
        w = jax.random.normal(kwt, (O, C, K), dtype=jnp.float32)
        b = jax.random.normal(kb, (O,), dtype=jnp.float32)
        for stride in strides:
            out = jax.block_until_ready(
                temporal_convolution(x, w, b, stride=stride, padding=padding,
                                     **tile_kwargs))
            ref = reference(x, w, b, stride, padding)
            assert out.shape == ref.shape, (stride, out.shape, ref.shape)
            np.testing.assert_allclose(np.asarray(out), np.asarray(ref),
                                       rtol=1e-5, atol=1e-5)

    # Small canonical shapes (batch=2, in_channels=4, out_channels=8, samples=16).
    check(2, 4, 8, 16, 3, 2, (1, 2))
    # Exercise several macro tiles, the in-kernel inner loop, dynamic stores and
    # the stride mask with a non-zero macro offset (small tiles on purpose).
    check(2, 4, 8, 300, 3, 2, (1, 3), inner_tile=128, macro_tile=256)

    print("KERNEL_OK")
</pallas_src>

<mosaic_0001>
module attributes {stable_mosaic.version = 11 : i64} {
  func.func @_tcn_kernel(%arg0: i32, %arg1: i32, %arg2: memref<1x4x256xf32, #tpu.memory_space<vmem>>, %arg3: memref<3x8x4xf32, #tpu.memory_space<vmem>>, %arg4: memref<8x1xf32, #tpu.memory_space<vmem>>, %arg5: memref<1x8x128xf32, #tpu.memory_space<vmem>>) attributes {dimension_semantics = [#tpu.dimension_semantics<parallel>, #tpu.dimension_semantics<arbitrary>], iteration_bounds = array<i64: 2, 1>, scalar_prefetch = 0 : i64, scratch_operands = 0 : i64, tpu.core_type = #tpu.core_type<tc>, window_params = [{transform_indices = @transform_0, window_bounds = array<i64: 1, 4, 256>}, {pipeline_mode = #tpu.pipeline_mode<synchronous>, transform_indices = @transform_1, window_bounds = array<i64: 3, 8, 4>}, {pipeline_mode = #tpu.pipeline_mode<synchronous>, transform_indices = @transform_2, window_bounds = array<i64: 8, 1>}, {transform_indices = @transform_3, window_bounds = array<i64: 1, 8, 128>}]} {
    %c128_i32 = arith.constant 128 : i32
    %0 = arith.muli %arg1, %c128_i32 : i32
    %1 = tpu.assume_multiple %0, 128 : i32
    %c0 = arith.constant 0 : index
    %c0_0 = arith.constant 0 : index
    %2 = vector.load %arg4[%c0, %c0_0] : memref<8x1xf32, #tpu.memory_space<vmem>>, vector<8x1xf32>
    %3 = vector.shape_cast %2 : vector<8x1xf32> to vector<8x1xf32>
    %4 = vector.broadcast %3 : vector<8x1xf32> to vector<8x128xf32>
    %c0_i32 = arith.constant 0 : i32
    %c128_i32_1 = arith.constant 128 : i32
    %5 = arith.muli %c0_i32, %c128_i32_1 : i32
    %6 = tpu.assume_multiple %5, 128 : i32
    %7 = arith.addi %1, %6 : i32
    %8 = tpu.assume_multiple %7, 128 : i32
    %c0_2 = arith.constant 0 : index
    %c0_3 = arith.constant 0 : index
    %9 = arith.index_cast %8 : i32 to index
    %10 = vector.load %arg2[%c0_2, %c0_3, %9] : memref<1x4x256xf32, #tpu.memory_space<vmem>>, vector<1x4x256xf32>
    %11 = vector.shape_cast %10 : vector<1x4x256xf32> to vector<4x256xf32>
    %cst = arith.constant 0.000000e+00 : f32
    %12 = vector.broadcast %cst : f32 to vector<8x128xf32>
    %13 = vector.extract_strided_slice %11 {offsets = [0, 0], sizes = [4, 128], strides = [1, 1]} : vector<4x256xf32> to vector<4x128xf32>
    %c0_4 = arith.constant 0 : index
    %c0_5 = arith.constant 0 : index
    %c0_6 = arith.constant 0 : index
    %14 = vector.load %arg3[%c0_4, %c0_5, %c0_6] : memref<3x8x4xf32, #tpu.memory_space<vmem>>, vector<1x8x4xf32>
    %15 = vector.shape_cast %14 : vector<1x8x4xf32> to vector<8x4xf32>
    %cst_7 = arith.constant dense<0.000000e+00> : vector<8x128xf32>
    %16 = tpu.matmul %15, %13, %cst_7 {dimension_numbers = #tpu.dot_dimension_numbers<[1], [0], [0], [1], [0, 0, 1, 1], [], []>} : vector<8x4xf32>, vector<4x128xf32>, vector<8x128xf32> -> vector<8x128xf32>
    %17 = arith.addf %12, %16 : vector<8x128xf32>
    %c255_i32 = arith.constant 255 : i32
    %18 = tpu.dynamic_rotate %11 by %c255_i32 dim 1 : vector<4x256xf32>, i32 -> vector<4x256xf32>
    %19 = vector.extract_strided_slice %18 {offsets = [0, 0], sizes = [4, 128], strides = [1, 1]} : vector<4x256xf32> to vector<4x128xf32>
    %c1 = arith.constant 1 : index
    %c0_8 = arith.constant 0 : index
    %c0_9 = arith.constant 0 : index
    %20 = vector.load %arg3[%c1, %c0_8, %c0_9] : memref<3x8x4xf32, #tpu.memory_space<vmem>>, vector<1x8x4xf32>
    %21 = vector.shape_cast %20 : vector<1x8x4xf32> to vector<8x4xf32>
    %cst_10 = arith.constant dense<0.000000e+00> : vector<8x128xf32>
    %22 = tpu.matmul %21, %19, %cst_10 {dimension_numbers = #tpu.dot_dimension_numbers<[1], [0], [0], [1], [0, 0, 1, 1], [], []>} : vector<8x4xf32>, vector<4x128xf32>, vector<8x128xf32> -> vector<8x128xf32>
    %23 = arith.addf %17, %22 : vector<8x128xf32>
    %c254_i32 = arith.constant 254 : i32
    %24 = tpu.dynamic_rotate %11 by %c254_i32 dim 1 : vector<4x256xf32>, i32 -> vector<4x256xf32>
    %25 = vector.extract_strided_slice %24 {offsets = [0, 0], sizes = [4, 128], strides = [1, 1]} : vector<4x256xf32> to vector<4x128xf32>
    %c2 = arith.constant 2 : index
    %c0_11 = arith.constant 0 : index
    %c0_12 = arith.constant 0 : index
    %26 = vector.load %arg3[%c2, %c0_11, %c0_12] : memref<3x8x4xf32, #tpu.memory_space<vmem>>, vector<1x8x4xf32>
    %27 = vector.shape_cast %26 : vector<1x8x4xf32> to vector<8x4xf32>
    %cst_13 = arith.constant dense<0.000000e+00> : vector<8x128xf32>
    %28 = tpu.matmul %27, %25, %cst_13 {dimension_numbers = #tpu.dot_dimension_numbers<[1], [0], [0], [1], [0, 0, 1, 1], [], []>} : vector<8x4xf32>, vector<4x128xf32>, vector<8x128xf32> -> vector<8x128xf32>
    %29 = arith.addf %23, %28 : vector<8x128xf32>
    %30 = arith.addf %29, %4 : vector<8x128xf32>
    %c0_14 = arith.constant 0 : index
    %c0_15 = arith.constant 0 : index
    %31 = arith.index_cast %6 : i32 to index
    %32 = vector.load %arg5[%c0_14, %c0_15, %31] : memref<1x8x128xf32, #tpu.memory_space<vmem>>, vector<1x8x128xf32>
    %33 = vector.shape_cast %32 : vector<1x8x128xf32> to vector<8x128xf32>
    %34 = vector.shape_cast %30 : vector<8x128xf32> to vector<1x8x128xf32>
    tpu.vector_store %arg5[%c0_14, %c0_15, %31], %34 {strides = array<i32>} : memref<1x8x128xf32, #tpu.memory_space<vmem>>, vector<1x8x128xf32>,
    %c1_i32 = arith.constant 1 : i32
    return
  }
  func.func @transform_0(%arg0: i32, %arg1: i32) -> (i32, i32, i32) {
    %c0_i32 = arith.constant 0 : i32
    %c0_i32_0 = arith.constant 0 : i32
    %c0_i32_1 = arith.constant 0 : i32
    return %arg0, %c0_i32, %c0_i32_0 : i32, i32, i32
  }
  func.func @transform_1(%arg0: i32, %arg1: i32) -> (i32, i32, i32) {
    %c0_i32 = arith.constant 0 : i32
    %c0_i32_0 = arith.constant 0 : i32
    %c0_i32_1 = arith.constant 0 : i32
    %c0_i32_2 = arith.constant 0 : i32
    return %c0_i32, %c0_i32_0, %c0_i32_1 : i32, i32, i32
  }
  func.func @transform_2(%arg0: i32, %arg1: i32) -> (i32, i32) {
    %c0_i32 = arith.constant 0 : i32
    %c0_i32_0 = arith.constant 0 : i32
    %c0_i32_1 = arith.constant 0 : i32
    return %c0_i32, %c0_i32_0 : i32, i32
  }
  func.func @transform_3(%arg0: i32, %arg1: i32) -> (i32, i32, i32) {
    %c0_i32 = arith.constant 0 : i32
    %c0_i32_0 = arith.constant 0 : i32
    return %arg0, %c0_i32, %arg1 : i32, i32, i32
  }
}

</mosaic_0001>

<bundles_post_ra>
// kernel: tpu_custom_call.1
= control target key start
LH: loop header
LB: loop body
LE: loop exit
PB: predicated region body
PF: predicated region fallthrough
CT: control target
= control target key end

     0   :  { %8 = vsyncpa [#allocation3], 0  ;;  %s863_s0 = inlined_call_operand.vmem [shape: f32[2,4,256], index: 0, kind: input, shape index: {}]   ;;  %s864_s1 = inlined_call_operand.vmem [shape: f32[3,8,4], index: 1, kind: input, shape index: {}]   ;;  %s865_s2 = inlined_call_operand.vmem [shape: f32[8,1], index: 2, kind: input, shape index: {}]   ;;  %s866_s3 = inlined_call_operand.hbm [shape: f32[2,8,128], index: 3, kind: output, shape index: {}]  }
   0x1   :  { %10 = vsyncpa [#allocation3 + $0x1], 0  ;;  %s743_s12 = smov 0   ;;  %s745_s13 = smov 0  }
   0x2   :  { %s747_s14 = smov 0   ;;  %s749_s15 = smov 0  }
   0x3   :  { %s751_s16 = smov 0   ;;  %s753_s17 = smov 0  }
   0x4 LB: > { %s535_s18 = sadd.s32 4294967295, %s715_s17   ;;  %s536_s19 = sadd.s32 4294967294, %s715_s17   ;;  %s715_s17 = sphi %s753_s17, %s16_s17   ;;  %s711_s16 = sphi %s751_s16, %s873_s16   ;;  %s707_s15 = sphi %s749_s15, %s872_s15   ;;  %s703_s14 = sphi %s747_s14, %s871_s14   ;;  %s699_s13 = sphi %s745_s13, %s870_s13   ;;  %s695_s12 = sphi %s743_s12, %s869_s12  }
   0x5   : > { %s28_s20 = sadd.s32 1, %s711_s16  ;;  %s105_s21 = sadd.s32 1, %s703_s14 }
   0x6   : > { %p30_p0 = scmp.ge.s32.totalorder %s28_s20, 2  ;;  %p115_p1 = scmp.ne.s32.totalorder %s703_s14, %s699_s13 }
   0x7   : > { %p116_p2 = scmp.eq.s32.totalorder %s535_s18, 1  ;;  %p121_p3 = scmp.ne.s32.totalorder %s699_s13, %s695_s12 }
   0x8   : > { %s875_s20 = smov (%p30_p0, %s28_s20), 0  ;;  %p122_p5 = scmp.eq.s32.totalorder %s536_s19, 1 }
   0x9   : > { %p783_p4 = por %p116_p2, %p115_p1  ;;  %s100_s23 = ssub.s32 %s711_s16, %s875_s20 }
   0xa   : > { %p539_p6 = scmp.ge.s32.totalorder %s715_s17, 1  ;;  %p103_p7 = scmp.eq.s32.totalorder %s100_s23, 0 }
   0xb   : > { %p790_p8 = por %p122_p5, %p121_p3  ;;  %p154_p9 = scmp.lt.s32.totalorder %s715_s17, 3 }
   0xc   : > { %s796_s25 = scalar_select %p103_p7, %s703_s14, %s105_s21  }
   0xd   : > { %p155_p10 = pnand %p539_p6, %p154_p9 }
   0xe   : > { %p178_p11 = scmp.lt.s32.totalorder (!%p155_p10), %s707_s15, 1  ;;  %s720_s6 = smov (!%p155_p10), 126  }
   0xf   : > { %158 = sbr.rel (%p155_p10) target bundleno = 360 (0x168), region = 32  ;;  %s721_s7 = smov (!%p155_p10), 127  }
  0x10   : > { %s175_s21 = sand.u32 (!%p155_p10), 1, %s699_s13  }
  0x11   : > { %s540_s23 = sshll.u32 (!%p155_p10), %s175_s21, 3  ;;  %s451_s5 = scalar_lea.sflag (!%p155_p10), [#allocation3], %s175_s21 }
  0x14   : > { %v717_v0 = vmov 0.0   ;;  %vm718_vm0 = vmmov 0   ;;  %s179_s26 = scalar_select %p178_p11, %s707_s15, 1  ;;  %vm214_vm1 = vcmask 1043456   ;;  %v719_v1 = vmov 0   ;;  %v196_v3 = vld [vmem:[%s864_s1] sm:$0xff] }
  0x15   : > { %562 = vmatprep.subr.mxu0 %v717_v0  ;;  %564 = vmatprep.mubr.msk.f32.mxu0 %vm718_vm0, %v717_v0  ;;  %vm210_vm2 = vcmask 31744   ;;  %v184_v5 = vld [vmem:[%s865_s2] sm:$0xff]  ;;  %v204_v6 = vlaneseq  ;;  %v543_v12 = vld [vmem:[%s864_s1 + $0x8] sm:$0xff]  ;;  %v548_v15 = vld [vmem:[%s864_s1 + $0x10] sm:$0xff] }
  0x16   : > { %567 = vmatprep.subr.mxu1 %v717_v0  ;;  %569 = vmatprep.mubr.msk.f32.mxu1 %vm718_vm0, %v717_v0  ;;  %s555_s27 = sshll.u32 %s179_s26, 3  ;;  %s552_s26 = sshll.u32 %s707_s15, 7 }
  0x17   : > { %s182_s30 = scalar_lea.vmem %s863_s0, %s555_s27  ;;  %637 = vset.pattern.permute.xlu0 %v719_v1  ;;  %v205_v7 = vand.u32 127, %v204_v6  ;;  %s177_s27 = scalar_lea.vmem [#allocation2], %s540_s23 }
  0x18   : > { %v195_v2 = vld [vmem:[%s182_s30] sm:$0xff]  ;;  %s465_s28 = sshll.u32 %s177_s27, 4  ;;  %s463_s4 = scalar_lea.hbm %s866_s3, %s552_s26  ;;  %s466_s28 = int_to_ptr.vmem [resolvable:$true] %s465_s28 }
  0x19   : > { %363 = vrot.lane.b32.xlu1 %v195_v2, %s720_s6  ;;  %200 = vrot.lane.b32.xlu0 %v195_v2, %s721_s7  ;;  %v198_v4 = vcombine.high %v195_v2, %v195_v2  ;;  %vm206_vm3 = vcmp.lt.s32.totalorder %v205_v7, 127  ;;  %vm367_vm4 = vcmp.lt.s32.totalorder %v205_v7, 126 }
  0x1a   : > { %568 = vmatpush3.msk.msra.mxu1 %vm214_vm1, %v195_v2 }
  0x1b   : > { %570 = vmatmul.mubr.msk.f32.vlgmr.msra.gmra.mxu1 %vm210_vm2, %v196_v3 }
  0x1d   : > { %365 = vrot.lane.b32.xlu1 %v198_v4, %s720_s6  ;;  %202 = vrot.lane.b32.xlu0 %v198_v4, %s721_s7  ;;  %s639_s6 = scalar_lea.vmem %s466_s28, 128  ;;  %s722_s7 = smov [#allocation2]  }
  0x1e   : > { %p640_p12 = scmp.ne.s32.totalorder %s466_s28, %s639_s6  ;;  %s643_s8 = sshll.u32 %s722_s7, 4  ;;  %s644_s8 = int_to_ptr.vmem [resolvable:$false] %s643_s8 }
  0x1f   : > { %s645_s15 = scalar_lea.vmem %s644_s8, 256  ;;  %p646_p1 = scmp.lt.s32.totalorder %s466_s28, %s644_s8 }
  0x20   : > { %p641_p13 = pnand %p640_p12, %p783_p4  ;;  %p647_p2 = scmp.lt.s32.totalorder %s645_s15, %s639_s6 }
  0x21   : > { %187 = vperm.xlu0 %637, %v184_v5  }
  0x22   : > { %p642_p0 = pneg %p641_p13  ;;  %p648_p3 = por %p647_p2, %p646_p1 }
  0x24   : > { %p649_p5 = pnand %p648_p3, %p642_p0 }
  0x8b   : > { %v364_v8 = vpop.permute.xlu1 %363  ;;  %v201_v9 = vpop.permute.xlu0 %200 }
  0x8f   : > { %v366_v10 = vpop.permute.xlu1 %365  ;;  %v203_v11 = vpop.permute.xlu0 %202 }
  0x90   : > { %v207_v13 = vsel %vm206_vm3, %v201_v9, %v203_v11  ;;  %v368_v14 = vsel %vm367_vm4, %v364_v8, %v366_v10 }
  0x91   : > { %563 = vmatpush3.msk.msra.mxu0 %vm214_vm1, %v207_v13 }
  0x92   : > { %565 = vmatmul.mubr.msk.f32.vlgmr.msra.gmra.mxu0 %vm210_vm2, %v543_v12  ;;  %572 = vmatprep.subr.mxu0 %v717_v0 }
  0x93   : > { %573 = vmatpush3.msk.msra.mxu0 %vm214_vm1, %v368_v14  ;;  %574 = vmatprep.mubr.msk.f32.mxu0 %vm718_vm0, %v717_v0 }
  0x96   : > { %575 = vmatmul.mubr.msk.f32.vlgmr.msra.gmra.mxu0 %vm210_vm2, %v548_v15 }
  0x9c   : > { %v188_v22 = vpop.permute.xlu0 %187 }
  0xdb   : > { %v359_v16 = vpop.f32.mrf.mxu1 }
  0xdd   : > { %v571_v17 = vpop.f32.mrf.mxu1 }
 0x152   : > { %v284_v18 = vpop.f32.mrf.mxu0 }
 0x153   : > { %v360_v20 = vadd.f32 %v359_v16, %v284_v18 }
 0x154   : > { %v566_v19 = vpop.f32.mrf.mxu0 }
 0x156   : > { %v443_v21 = vpop.f32.mrf.mxu0 }
 0x157   : > { %v447_v23 = vadd.f32 %v443_v21, %v360_v20 }
 0x158   : > { %v576_v24 = vpop.f32.mrf.mxu0 }
 0x159   : > { %v448_v25 = vadd.f32 %v447_v23, %v188_v22 }
 0x15b   : > { %449 = vst [vmem:[%s177_s27] sm:$0xff] %v448_v25 }
 0x15c   : > { %652 = shalt.err (!%p649_p5)
}
 0x15d   : > { %s653_s9 = scalar_lea.hbm %s463_s4, 128  ;;  %s657_s18 = scalar_lea.hbm %s866_s3, 256 }
 0x15e   : > { %p654_p6 = scmp.ne.s32.totalorder %s463_s4, %s653_s9  ;;  %p658_p10 = scmp.lt.s32.totalorder %s463_s4, %s866_s3 }
 0x15f   : > { %p659_p11 = scmp.lt.s32.totalorder %s657_s18, %s653_s9 }
 0x160   : > { %p655_p7 = pnand %p654_p6, %p783_p4 }
 0x161   : > { %p660_p12 = por %p659_p11, %p658_p10 }
 0x162   : > { %p656_p9 = pneg %p655_p7 }
 0x164   : > { %p661_p13 = pnand %p660_p12, %p656_p9 }
 0x166   : > { %664 = shalt.err (!%p661_p13)
}
 0x167   : > { %577 = dma.vmem_to_hbm [thread:$0]  (%p783_p4), %s466_s28, 128, %s463_s4, %s451_s5  }
 0x168 PF: > { %p583_p0 = scmp.ge.s32.totalorder %s715_s17, 2  ;;  %s477_s23 = sand.u32 1, %s695_s12  }
 0x169   : > { %s478_s26 = scalar_lea.sflag [#allocation3], %s477_s23 }
 0x16a   : > { %p580_p1 = pnand %p583_p0, %p790_p8 }
 0x16c   : > { %p581_p2 = pneg %p580_p1 }
 0x16e   : > { %690 = dma.done.wait (%p581_p2), %s478_s26, 128  }
 0x16f   : > { %692 = vsyncadd (%p581_p2), %s478_s26, 4294967168  ;;  %s16_s17 = sadd.s32 1, %s715_s17   ;;  %s869_s12 = smov %s699_s13 }
 0x170   : > { %p13_p3 = scmp.ge.s32.totalorder %s16_s17, 4   ;;  %s870_s13 = smov %s703_s14 }
 0x171   : > { %s871_s14 = smov %s796_s25  ;;  %s872_s15 = smov %s711_s16 }
 0x172   : > { %s873_s16 = smov %s875_s20  ;;  %15 = sbr.rel (!%p13_p3) target bundleno = 4 (0x4), region = 70 }
 0x177   :  { %483 = vsyncpa [#allocation3], 1 }
 0x178   :  { %485 = vsyncpa [#allocation3 + $0x1], 1 }

</bundles_post_ra>
